<compile_context>
chip_gen: v7x
topology: tpu7x:2x2x1
jax: 0.10.0
libtpu: 0.0.40
codegen_flags: <defaults>
</compile_context>

<pallas_src>
import jax
import jax.numpy as jnp
from jax.experimental import pallas as pl
from jax.experimental.pallas import tpu as pltpu


# Group element sign vectors (identity first), exactly as in the nn.Module.
_GROUP_SIGNS = {
    "trivial":             ((1.0, 1.0),),
    "flipH":               ((1.0, 1.0), (1.0, -1.0)),
    "flipW":               ((1.0, 1.0), (-1.0, 1.0)),
    "rot180":              ((1.0, 1.0), (-1.0, -1.0)),
    "flipH_and_or_flipW":  ((1.0, 1.0), (1.0, -1.0), (-1.0, 1.0), (-1.0, -1.0)),
}

_SUBLANE = 8
# Rows of B per block. Both the (tb, 2) input tile and the (tb, 2G) output tile
# are lane-padded to 128 lanes in VMEM (~tb*512 bytes each), so double-buffered
# in+out at tb=8192 is ~16 MiB -- fits every generation once we raise the scoped
# VMEM limit explicitly below.
_MAX_TILE_B = 8192
_VMEM_LIMIT_BYTES = 32 * 1024 * 1024


def _cdiv(a: int, b: int) -> int:
    return -(-a // b)


def _make_kernel(signs):
    """Kernel specialized to a compile-time ±1 sign table (tuple of (s0, s1))."""
    G = len(signs)

    def kernel(x_ref, o_ref):
        # x_ref: (tb, 2)      -- read the original layout, no pre-transpose.
        # o_ref: (tb, 2*G)    -- column j = d*G + g holds x[:, d] * signs[g][d].
        x = x_ref[...]
        neg = -x                                    # single VPU op; signs are exactly ±1
        pieces = []
        for d in range(2):
            for g in range(G):
                src = x if signs[g][d] > 0 else neg
                pieces.append(src[:, d:d + 1])      # static single-lane slice
        # Lane-concat of <= 8 narrow pieces stays within vregs; one full-tile store.
        o_ref[...] = jnp.concatenate(pieces, axis=1).astype(o_ref.dtype)

    return kernel


def _choose_tiling(B: int, block_b: int | None):
    """Returns (tb, padded_B, n_grid_steps)."""
    if block_b is not None:
        tb = int(block_b)
        n = _cdiv(B, tb)
    elif B <= _MAX_TILE_B:
        return B, B, 1                   # single full-extent block: no pad, no slice
    else:
        n = _cdiv(B, _MAX_TILE_B)
        tb = _cdiv(_cdiv(B, n), _SUBLANE) * _SUBLANE   # minimal padding, sublane-aligned
    if n > 1 and tb % _SUBLANE != 0:
        raise ValueError("block_b must be a multiple of 8 unless it covers the full batch.")
    return tb, n * tb, n


def group_lift(x: jax.Array, group: str, block_b: int | None = None,
               out_dtype=None) -> jax.Array:
    """Pallas implementation of GroupLift.forward. x: (B, 2) -> (B, 2, G)."""
    if group not in _GROUP_SIGNS:
        raise NotImplementedError(f"group {group} not implemented.")
    signs = _GROUP_SIGNS[group]
    G = len(signs)
    B, D = x.shape
    assert D == 2, "GroupLift operates on 2-D points."
    out_dtype = x.dtype if out_dtype is None else out_dtype

    # Identity-only group: no kernel launch / no data expansion.
    if G == 1:
        return x.astype(out_dtype)[:, :, None]

    tb, B_pad, n = _choose_tiling(B, block_b)
    x_in = x if B_pad == B else jnp.pad(x, ((0, B_pad - B), (0, 0)))

    y = pl.pallas_call(
        _make_kernel(signs),
        out_shape=jax.ShapeDtypeStruct((B_pad, D * G), out_dtype),
        grid=(n,),
        in_specs=[pl.BlockSpec((tb, D), lambda i: (i, 0))],
        out_specs=pl.BlockSpec((tb, D * G), lambda i: (i, 0)),
        compiler_params=pltpu.CompilerParams(
            dimension_semantics=("parallel",),
            vmem_limit_bytes=_VMEM_LIMIT_BYTES),
    )(x_in)

    if B_pad != B:
        y = y[:B]
    # (B, 2*G) -> (B, 2, G): contiguous split of the minor axis; matches
    # torch.stack(X, dim=2) since column order is j = d*G + g.
    return y.reshape(B, D, G)


def _reference(x: jax.Array, group: str) -> jax.Array:
    signs = jnp.asarray(_GROUP_SIGNS[group], dtype=x.dtype)   # (G, 2)
    X = [x * signs[g] for g in range(signs.shape[0])]         # list of (B, 2)
    return jnp.stack(X, axis=2)                               # (B, 2, G)


if __name__ == "__main__":
    key = jax.random.PRNGKey(0)
    ok = True
    # Cases: aligned single block, unaligned single full-extent block,
    # multi-step grid, and the pad+slice path.
    cases = [(8, None), (10, None), (256, 128), (260, 128)]
    for B, blk in cases:
        x = jax.random.normal(key, (B, 2), dtype=jnp.float32)
        for group in ["trivial", "flipH", "flipW", "rot180", "flipH_and_or_flipW"]:
            y = group_lift(x, group, block_b=blk)
            jax.block_until_ready(y)
            y_ref = _reference(x, group)
            if y.shape != y_ref.shape or not bool(jnp.allclose(y, y_ref)):
                ok = False
                print(f"MISMATCH for group={group}, B={B}, block_b={blk}")

    if ok:
        print("KERNEL_OK")
</pallas_src>

<mosaic_0001>
module attributes {stable_mosaic.version = 11 : i64} {
  func.func @kernel(%arg0: i32, %arg1: memref<8x2xf32, #tpu.memory_space<vmem>>, %arg2: memref<8x4xf32, #tpu.memory_space<vmem>>) attributes {dimension_semantics = [#tpu.dimension_semantics<parallel>], iteration_bounds = array<i64: 1>, scalar_prefetch = 0 : i64, scratch_operands = 0 : i64, tpu.core_type = #tpu.core_type<tc>, window_params = [{transform_indices = @transform_0, window_bounds = array<i64: 8, 2>}, {transform_indices = @transform_1, window_bounds = array<i64: 8, 4>}]} {
    %c0 = arith.constant 0 : index
    %c0_0 = arith.constant 0 : index
    %0 = vector.load %arg1[%c0, %c0_0] : memref<8x2xf32, #tpu.memory_space<vmem>>, vector<8x2xf32>
    %cst = arith.constant 0.000000e+00 : f32
    %1 = vector.broadcast %cst : f32 to vector<8x2xf32>
    %2 = arith.subf %1, %0 : vector<8x2xf32>
    %3 = vector.extract_strided_slice %0 {offsets = [0, 0], sizes = [8, 1], strides = [1, 1]} : vector<8x2xf32> to vector<8x1xf32>
    %4 = vector.extract_strided_slice %0 {offsets = [0, 0], sizes = [8, 1], strides = [1, 1]} : vector<8x2xf32> to vector<8x1xf32>
    %5 = vector.extract_strided_slice %0 {offsets = [0, 1], sizes = [8, 1], strides = [1, 1]} : vector<8x2xf32> to vector<8x1xf32>
    %6 = vector.extract_strided_slice %2 {offsets = [0, 1], sizes = [8, 1], strides = [1, 1]} : vector<8x2xf32> to vector<8x1xf32>
    %7 = tpu.concatenate %3, %4, %5, %6 in 1 : vector<8x1xf32>, vector<8x1xf32>, vector<8x1xf32>, vector<8x1xf32> -> vector<8x4xf32>
    %c0_1 = arith.constant 0 : index
    %c0_2 = arith.constant 0 : index
    %8 = vector.load %arg2[%c0_1, %c0_2] : memref<8x4xf32, #tpu.memory_space<vmem>>, vector<8x4xf32>
    tpu.vector_store %arg2[%c0_1, %c0_2], %7 {strides = array<i32>} : memref<8x4xf32, #tpu.memory_space<vmem>>, vector<8x4xf32>,
    return
  }
  func.func @transform_0(%arg0: i32) -> (i32, i32) {
    %c0_i32 = arith.constant 0 : i32
    %c0_i32_0 = arith.constant 0 : i32
    return %arg0, %c0_i32 : i32, i32
  }
  func.func @transform_1(%arg0: i32) -> (i32, i32) {
    %c0_i32 = arith.constant 0 : i32
    %c0_i32_0 = arith.constant 0 : i32
    return %arg0, %c0_i32 : i32, i32
  }
}

</mosaic_0001>

<bundles_post_ra>
// kernel: tpu_custom_call.1
= control target key start
LH: loop header
LB: loop body
LE: loop exit
PB: predicated region body
PF: predicated region fallthrough
CT: control target
= control target key end

     0   :  { %s32_s8 = smov 1   ;;  %s33_s9 = smov 2   ;;  %vm18_vm0 = vcmask 7168   ;;  %vm20_vm1 = vcmask 15360   ;;  %vm22_vm2 = vcmask 23552   ;;  %vm24_vm3 = vcmask 31744   ;;  %s50_s0 = inlined_call_operand.vmem [shape: f32[8,2], index: 0, kind: input, shape index: {}]   ;;  %s51_s1 = inlined_call_operand.vmem [shape: f32[8,4], index: 1, kind: output, shape index: {}]  }
   0x1   :  { %v8_v0 = vld [vmem:[%s50_s0] sm:$0xff] }
   0x2   :  { %11 = vrot.lane.b32.xlu0 %v8_v0, %s32_s8  ;;  %v9_v1 = vsub.f32 0.0, %v8_v0 }
   0x6   :  { %15 = vrot.lane.b32.xlu0 %v9_v1, %s33_s9 }
  0x74   :  { %v12_v2 = vpop.permute.xlu0 %11 }
  0x75   :  { %v19_v3 = vsel %vm18_vm0, %v8_v0, %v12_v2 }
  0x76   :  { %v21_v4 = vsel %vm20_vm1, %v19_v3, %v12_v2 }
  0x78   :  { %v16_v5 = vpop.permute.xlu0 %15 }
  0x79   :  { %v23_v6 = vsel %vm22_vm2, %v21_v4, %v16_v5 }
  0x7a   :  { %25 = vst.msk [vmem:[%s51_s1] sm:$0xff] %vm24_vm3, %v23_v6 }

</bundles_post_ra>
